<compile_context>
chip_gen: v7x
topology: tpu7x:2x2x1
jax: 0.10.0
libtpu: 0.0.40
codegen_flags: <defaults>
</compile_context>

<pallas_src>
import jax
import jax.numpy as jnp
from jax.experimental import pallas as pl
from jax.experimental.pallas import tpu as pltpu

EMBEDDING_SIZE = 32
ACTION_SIZE = 2
HIDDEN_SIZE = 64

GROUP = 4                              # logical batch rows per lane-dense (128-wide) row
VMEM_LIMIT_BYTES = 48 * 1024 * 1024    # explicit scoped-VMEM limit (v5e default is 16 MiB)

# Cached capability flag: single-buffered resident operands via pipeline_mode.
_SINGLE_BUFFER_WEIGHTS_OK = [hasattr(pl, "Buffered")]


def _round_up(x, m):
    return -(-x // m) * m


def _cdiv(a, b):
    return -(-a // b)


def _sublane_multiple(dtype):
    # Native second-minor multiple: 8 rows for 4-byte, 16 for 2-byte, 32 for 1-byte.
    return max(8, 32 // jnp.dtype(dtype).itemsize)


def _block_diag(w, g):
    # [k, n] -> [g*k, g*n] block-diagonal replication (kron with identity).
    return jnp.kron(jnp.eye(g, dtype=w.dtype), w)


def _pick_tile(bg_pad, max_tbg, sub):
    """Pick the grouped-row tile size and grid length.

    Prefers an even number of grid steps whenever there is more than one step so
    the v7x megacore 'parallel' axis splits evenly across its two TensorCores."""
    tbg = min(max_tbg, bg_pad)
    tbg = max(sub, (tbg // sub) * sub)
    steps = _cdiv(bg_pad, tbg)
    for _ in range(4):
        if steps <= 1 or steps % 2 == 0:
            break
        tbg = max(sub, _round_up(_cdiv(bg_pad, steps + 1), sub))
        steps = _cdiv(bg_pad, tbg)
    return tbg, steps


def _predictor_kernel(eg_ref, ag_ref, w1e_ref, w1a_ref, b1_ref, w2_ref, b2_ref, o_ref):
    # eg_ref : [TBG, G*E]   grouped embeddings (lane-dense, 128 wide)  - streamed
    # ag_ref : [TBG, G*A]   grouped actions (8 wide)                   - streamed
    # w1e_ref: [G*E, G*H]   block-diag W1[:E]    (128 x 256)           - resident
    # w1a_ref: [G*A, G*H]   block-diag W1[E:E+A] (  8 x 256)           - resident
    # b1_ref : [1,   G*H]   tiled bias1 (f32)                          - resident
    # w2_ref : [G*H, G*E]   block-diag W2        (256 x 128)           - resident
    # b2_ref : [1,   G*E]   tiled bias2 (f32)                          - resident
    # o_ref  : [TBG, G*E]   grouped output (lane-dense, 128 wide)      - streamed
    cdt = w1e_ref.dtype                      # MXU input dtype (bf16 by default)
    h = jnp.dot(eg_ref[...].astype(cdt), w1e_ref[...],
                preferred_element_type=jnp.float32)
    h = h + jnp.dot(ag_ref[...].astype(cdt), w1a_ref[...],
                    preferred_element_type=jnp.float32)
    h = jnp.maximum(h + b1_ref[...], 0.0)    # f32 bias + ReLU epilogue (safe on v5e)
    y = jnp.dot(h.astype(cdt), w2_ref[...],
                preferred_element_type=jnp.float32) + b2_ref[...]
    o_ref[...] = y.astype(o_ref.dtype)


def predictor_forward(embedding, action, params, *, block_rows=16384,
                      compute_dtype=jnp.bfloat16):
    """Predictor forward. embedding: [B, E], action: [B, A] -> [B, E].

    block_rows   : logical batch rows per grid step (grouped rows = block_rows/4).
    compute_dtype: dtype fed to the MXU (accumulation is always f32; bias/ReLU
                   epilogue is f32).  Default bf16 per the perf review; pass
                   jnp.float32 for bit-exact f32 semantics.
    Output dtype always matches the embedding dtype.
    NOTE: for tiny batches (B < ~512) fusing into the surrounding model via plain
    XLA is cheaper than a standalone Pallas call; kept here for the exercise.
    """
    B, E = embedding.shape
    A = action.shape[-1]
    w1, b1, w2, b2 = params["w1"], params["b1"], params["w2"], params["b2"]
    H = w1.shape[1]
    dt = embedding.dtype
    cdt = jnp.dtype(compute_dtype)
    G = GROUP
    sub = _sublane_multiple(dt)

    # Block-diagonal weight replication (tiny: <= 256x256) so GROUP logical rows
    # share a single lane-dense vreg row.  Weights are stored in the MXU dtype;
    # biases stay f32 for the epilogue.
    w1e_bd = _block_diag(w1[:E].astype(cdt), G)        # [G*E, G*H]
    w1a_bd = _block_diag(w1[E:E + A].astype(cdt), G)   # [G*A, G*H]
    w2_bd = _block_diag(w2.astype(cdt), G)             # [G*H, G*E]
    b1g = jnp.tile(b1.astype(jnp.float32), G)[None, :]   # [1, G*H]
    b2g = jnp.tile(b2.astype(jnp.float32), G)[None, :]   # [1, G*E]

    # Pad only to the layout minimum (GROUP * sublane rows) -- NOT up to the block
    # size.  The last grid step handles any remaining ragged tail as a partial
    # block (OOB reads are unused garbage rows; OOB writes are dropped).
    B_pad = _round_up(B, G * sub)
    if B_pad != B:
        pad = B_pad - B
        embedding = jnp.pad(embedding, ((0, pad), (0, 0)))
        action = jnp.pad(action, ((0, pad), (0, 0)))
    Bg_pad = B_pad // G

    eg = embedding.reshape(Bg_pad, G * E)   # free row-major reshape -> [*, 128]
    ag = action.reshape(Bg_pad, G * A)      # -> [*, 8]

    max_tbg = max(sub, (block_rows // G) // sub * sub)
    tbg, steps = _pick_tile(Bg_pad, max_tbg, sub)

    def call(single_buffer_weights):
        res_kwargs = {}
        if single_buffer_weights:
            res_kwargs = {"pipeline_mode": pl.Buffered(1)}

        def resident(shape):
            return pl.BlockSpec(shape, lambda i: (0, 0), **res_kwargs)

        return pl.pallas_call(
            _predictor_kernel,
            out_shape=jax.ShapeDtypeStruct((Bg_pad, G * E), dt),
            grid=(steps,),
            in_specs=[
                pl.BlockSpec((tbg, G * E), lambda i: (i, 0)),   # eg   (streamed)
                pl.BlockSpec((tbg, G * A), lambda i: (i, 0)),   # ag   (streamed)
                resident((G * E, G * H)),                       # w1e  (resident)
                resident((G * A, G * H)),                       # w1a  (resident)
                resident((1, G * H)),                           # b1   (resident)
                resident((G * H, G * E)),                       # w2   (resident)
                resident((1, G * E)),                           # b2   (resident)
            ],
            out_specs=pl.BlockSpec((tbg, G * E), lambda i: (i, 0)),
            compiler_params=pltpu.CompilerParams(
                dimension_semantics=("parallel",),   # megacore sharding on v7x
                vmem_limit_bytes=VMEM_LIMIT_BYTES),
        )(eg, ag, w1e_bd, w1a_bd, b1g, w2_bd, b2g)

    if _SINGLE_BUFFER_WEIGHTS_OK[0]:
        try:
            out_g = call(True)
        except Exception:
            # Fallback for Pallas versions without BlockSpec(pipeline_mode=) or
            # single-buffered inputs; real errors re-surface from call(False).
            _SINGLE_BUFFER_WEIGHTS_OK[0] = False
            out_g = call(False)
    else:
        out_g = call(False)

    # Free row-major reshape back to [B_pad, E]; drop the padding rows.
    return out_g.reshape(B_pad, E)[:B]


def init_params(key, embedding_size=EMBEDDING_SIZE, action_size=ACTION_SIZE,
                hidden_size=HIDDEN_SIZE):
    # Deterministic init mirroring nn.Linear shapes (stored transposed: [in, out]).
    k1, k2, k3, k4 = jax.random.split(key, 4)
    in1 = embedding_size + action_size
    lim1 = 1.0 / jnp.sqrt(in1)
    lim2 = 1.0 / jnp.sqrt(hidden_size)
    return {
        "w1": jax.random.uniform(k1, (in1, hidden_size), jnp.float32, -lim1, lim1),
        "b1": jax.random.uniform(k2, (hidden_size,), jnp.float32, -lim1, lim1),
        "w2": jax.random.uniform(k3, (hidden_size, embedding_size), jnp.float32, -lim2, lim2),
        "b2": jax.random.uniform(k4, (embedding_size,), jnp.float32, -lim2, lim2),
    }


def _reference(embedding, action, params):
    # Pure-JAX reference at HIGHEST matmul precision (true f32 on TPU).
    x = jnp.concatenate(
        [embedding.astype(jnp.float32), action.astype(jnp.float32)], axis=-1)
    h = jnp.maximum(
        jnp.dot(x, params["w1"], precision=jax.lax.Precision.HIGHEST) + params["b1"], 0.0)
    return jnp.dot(h, params["w2"], precision=jax.lax.Precision.HIGHEST) + params["b2"]


if __name__ == "__main__":
    key = jax.random.PRNGKey(0)
    kp, ke, ka, ke2, ka2, ke3, ka3 = jax.random.split(key, 7)

    params = init_params(kp)

    # Small shape consistent with the module (batch=8).
    batch = 8
    embedding = jax.random.normal(ke, (batch, EMBEDDING_SIZE), jnp.float32)
    action = jax.random.normal(ka, (batch, ACTION_SIZE), jnp.float32)
    ref = _reference(embedding, action, params)

    # 1) Bit-exact f32 path.
    out_f32 = jax.block_until_ready(
        predictor_forward(embedding, action, params, compute_dtype=jnp.float32))
    assert out_f32.shape == (batch, EMBEDDING_SIZE)
    assert jnp.allclose(out_f32, ref, atol=1e-4, rtol=1e-4)

    # 2) Default perf path: bf16 MXU inputs, f32 accumulation, f32 I/O.
    out_def = jax.block_until_ready(predictor_forward(embedding, action, params))
    assert out_def.dtype == jnp.float32
    assert jnp.allclose(out_def, ref, atol=5e-2, rtol=5e-2)

    # 3) Multi-step grid + ragged tail (minimal padding) + even-step shaping.
    B2 = 1040
    emb2 = jax.random.normal(ke2, (B2, EMBEDDING_SIZE), jnp.float32)
    act2 = jax.random.normal(ka2, (B2, ACTION_SIZE), jnp.float32)
    out2 = jax.block_until_ready(
        predictor_forward(emb2, act2, params, block_rows=512,
                          compute_dtype=jnp.float32))
    ref2 = _reference(emb2, act2, params)
    assert out2.shape == (B2, EMBEDDING_SIZE)
    assert jnp.allclose(out2, ref2, atol=1e-4, rtol=1e-4)

    # 4) Large batch on the default big-tile path (exercises vmem limit + even grid).
    B3 = 40960
    emb3 = jax.random.normal(ke3, (B3, EMBEDDING_SIZE), jnp.float32)
    act3 = jax.random.normal(ka3, (B3, ACTION_SIZE), jnp.float32)
    out3 = jax.block_until_ready(
        predictor_forward(emb3, act3, params, compute_dtype=jnp.float32))
    ref3 = _reference(emb3, act3, params)
    assert out3.shape == (B3, EMBEDDING_SIZE)
    assert jnp.allclose(out3, ref3, atol=1e-4, rtol=1e-4)

    # 5) bf16 activation I/O path (halves HBM streaming traffic; f32 accumulation).
    out_bf16 = jax.block_until_ready(
        predictor_forward(embedding.astype(jnp.bfloat16),
                          action.astype(jnp.bfloat16), params))
    assert out_bf16.dtype == jnp.bfloat16
    assert jnp.allclose(out_bf16.astype(jnp.float32), ref, atol=5e-2, rtol=5e-2)

    print("KERNEL_OK")
</pallas_src>

<mosaic_0001>
module attributes {stable_mosaic.version = 11 : i64} {
  func.func @_predictor_kernel(%arg0: i32, %arg1: memref<8x128xf32, #tpu.memory_space<vmem>>, %arg2: memref<8x8xf32, #tpu.memory_space<vmem>>, %arg3: memref<128x256xf32, #tpu.memory_space<vmem>>, %arg4: memref<8x256xf32, #tpu.memory_space<vmem>>, %arg5: memref<1x256xf32, #tpu.memory_space<vmem>>, %arg6: memref<256x128xf32, #tpu.memory_space<vmem>>, %arg7: memref<1x128xf32, #tpu.memory_space<vmem>>, %arg8: memref<8x128xf32, #tpu.memory_space<vmem>>) attributes {dimension_semantics = [#tpu.dimension_semantics<parallel>], iteration_bounds = array<i64: 1>, scalar_prefetch = 0 : i64, scratch_operands = 0 : i64, tpu.core_type = #tpu.core_type<tc>, window_params = [{transform_indices = @transform_0, window_bounds = array<i64: 8, 128>}, {transform_indices = @transform_1, window_bounds = array<i64: 8, 8>}, {pipeline_mode = #tpu.pipeline_mode<synchronous>, transform_indices = @transform_2, window_bounds = array<i64: 128, 256>}, {pipeline_mode = #tpu.pipeline_mode<synchronous>, transform_indices = @transform_3, window_bounds = array<i64: 8, 256>}, {pipeline_mode = #tpu.pipeline_mode<synchronous>, transform_indices = @transform_4, window_bounds = array<i64: 1, 256>}, {pipeline_mode = #tpu.pipeline_mode<synchronous>, transform_indices = @transform_5, window_bounds = array<i64: 256, 128>}, {pipeline_mode = #tpu.pipeline_mode<synchronous>, transform_indices = @transform_6, window_bounds = array<i64: 1, 128>}, {transform_indices = @transform_7, window_bounds = array<i64: 8, 128>}]} {
    %c0 = arith.constant 0 : index
    %c0_0 = arith.constant 0 : index
    %0 = vector.load %arg1[%c0, %c0_0] : memref<8x128xf32, #tpu.memory_space<vmem>>, vector<8x128xf32>
    %c0_1 = arith.constant 0 : index
    %c0_2 = arith.constant 0 : index
    %1 = vector.load %arg3[%c0_1, %c0_2] : memref<128x256xf32, #tpu.memory_space<vmem>>, vector<128x256xf32>
    %cst = arith.constant dense<0.000000e+00> : vector<8x256xf32>
    %2 = tpu.matmul %0, %1, %cst {dimension_numbers = #tpu.dot_dimension_numbers<[1], [0], [0], [1], [0, 0, 1, 1], [], []>} : vector<8x128xf32>, vector<128x256xf32>, vector<8x256xf32> -> vector<8x256xf32>
    %c0_3 = arith.constant 0 : index
    %c0_4 = arith.constant 0 : index
    %3 = vector.load %arg2[%c0_3, %c0_4] : memref<8x8xf32, #tpu.memory_space<vmem>>, vector<8x8xf32>
    %c0_5 = arith.constant 0 : index
    %c0_6 = arith.constant 0 : index
    %4 = vector.load %arg4[%c0_5, %c0_6] : memref<8x256xf32, #tpu.memory_space<vmem>>, vector<8x256xf32>
    %cst_7 = arith.constant dense<0.000000e+00> : vector<8x256xf32>
    %5 = tpu.matmul %3, %4, %cst_7 {dimension_numbers = #tpu.dot_dimension_numbers<[1], [0], [0], [1], [0, 0, 1, 1], [], []>} : vector<8x8xf32>, vector<8x256xf32>, vector<8x256xf32> -> vector<8x256xf32>
    %6 = arith.addf %2, %5 : vector<8x256xf32>
    %c0_8 = arith.constant 0 : index
    %c0_9 = arith.constant 0 : index
    %7 = vector.load %arg5[%c0_8, %c0_9] : memref<1x256xf32, #tpu.memory_space<vmem>>, vector<1x256xf32>
    %8 = vector.broadcast %7 : vector<1x256xf32> to vector<8x256xf32>
    %9 = arith.addf %6, %8 : vector<8x256xf32>
    %cst_10 = arith.constant 0.000000e+00 : f32
    %10 = vector.broadcast %cst_10 : f32 to vector<8x256xf32>
    %11 = arith.maximumf %9, %10 : vector<8x256xf32>
    %c0_11 = arith.constant 0 : index
    %c0_12 = arith.constant 0 : index
    %12 = vector.load %arg6[%c0_11, %c0_12] : memref<256x128xf32, #tpu.memory_space<vmem>>, vector<256x128xf32>
    %cst_13 = arith.constant dense<0.000000e+00> : vector<8x128xf32>
    %13 = tpu.matmul %11, %12, %cst_13 {dimension_numbers = #tpu.dot_dimension_numbers<[1], [0], [0], [1], [0, 0, 1, 1], [], []>} : vector<8x256xf32>, vector<256x128xf32>, vector<8x128xf32> -> vector<8x128xf32>
    %c0_14 = arith.constant 0 : index
    %c0_15 = arith.constant 0 : index
    %14 = vector.load %arg7[%c0_14, %c0_15] : memref<1x128xf32, #tpu.memory_space<vmem>>, vector<1x128xf32>
    %15 = vector.broadcast %14 : vector<1x128xf32> to vector<8x128xf32>
    %16 = arith.addf %13, %15 : vector<8x128xf32>
    %c0_16 = arith.constant 0 : index
    %c0_17 = arith.constant 0 : index
    %17 = vector.load %arg8[%c0_16, %c0_17] : memref<8x128xf32, #tpu.memory_space<vmem>>, vector<8x128xf32>
    tpu.vector_store %arg8[%c0_16, %c0_17], %16 {strides = array<i32>} : memref<8x128xf32, #tpu.memory_space<vmem>>, vector<8x128xf32>,
    return
  }
  func.func @transform_0(%arg0: i32) -> (i32, i32) {
    %c0_i32 = arith.constant 0 : i32
    %c0_i32_0 = arith.constant 0 : i32
    return %arg0, %c0_i32 : i32, i32
  }
  func.func @transform_1(%arg0: i32) -> (i32, i32) {
    %c0_i32 = arith.constant 0 : i32
    %c0_i32_0 = arith.constant 0 : i32
    return %arg0, %c0_i32 : i32, i32
  }
  func.func @transform_2(%arg0: i32) -> (i32, i32) {
    %c0_i32 = arith.constant 0 : i32
    %c0_i32_0 = arith.constant 0 : i32
    %c0_i32_1 = arith.constant 0 : i32
    return %c0_i32, %c0_i32_0 : i32, i32
  }
  func.func @transform_3(%arg0: i32) -> (i32, i32) {
    %c0_i32 = arith.constant 0 : i32
    %c0_i32_0 = arith.constant 0 : i32
    %c0_i32_1 = arith.constant 0 : i32
    return %c0_i32, %c0_i32_0 : i32, i32
  }
  func.func @transform_4(%arg0: i32) -> (i32, i32) {
    %c0_i32 = arith.constant 0 : i32
    %c0_i32_0 = arith.constant 0 : i32
    %c0_i32_1 = arith.constant 0 : i32
    return %c0_i32, %c0_i32_0 : i32, i32
  }
  func.func @transform_5(%arg0: i32) -> (i32, i32) {
    %c0_i32 = arith.constant 0 : i32
    %c0_i32_0 = arith.constant 0 : i32
    %c0_i32_1 = arith.constant 0 : i32
    return %c0_i32, %c0_i32_0 : i32, i32
  }
  func.func @transform_6(%arg0: i32) -> (i32, i32) {
    %c0_i32 = arith.constant 0 : i32
    %c0_i32_0 = arith.constant 0 : i32
    %c0_i32_1 = arith.constant 0 : i32
    return %c0_i32, %c0_i32_0 : i32, i32
  }
  func.func @transform_7(%arg0: i32) -> (i32, i32) {
    %c0_i32 = arith.constant 0 : i32
    %c0_i32_0 = arith.constant 0 : i32
    return %arg0, %c0_i32 : i32, i32
  }
}

module attributes {stable_mosaic.version = 11 : i64} {
  func.func @_predictor_kernel(%arg0: i32, %arg1: memref<8x128xf32, #tpu.memory_space<vmem>>, %arg2: memref<8x8xf32, #tpu.memory_space<vmem>>, %arg3: memref<128x256xf32, #tpu.memory_space<vmem>>, %arg4: memref<8x256xf32, #tpu.memory_space<vmem>>, %arg5: memref<1x256xf32, #tpu.memory_space<vmem>>, %arg6: memref<256x128xf32, #tpu.memory_space<vmem>>, %arg7: memref<1x128xf32, #tpu.memory_space<vmem>>, %arg8: memref<8x128xf32, #tpu.memory_space<vmem>>) attributes {dimension_semantics = [#tpu.dimension_semantics<parallel>], iteration_bounds = array<i64: 1>, scalar_prefetch = 0 : i64, scratch_operands = 0 : i64, tpu.core_type = #tpu.core_type<tc>, window_params = [{transform_indices = @transform_0, window_bounds = array<i64: 8, 128>}, {transform_indices = @transform_1, window_bounds = array<i64: 8, 8>}, {pipeline_mode = #tpu.pipeline_mode<synchronous>, transform_indices = @transform_2, window_bounds = array<i64: 128, 256>}, {pipeline_mode = #tpu.pipeline_mode<synchronous>, transform_indices = @transform_3, window_bounds = array<i64: 8, 256>}, {pipeline_mode = #tpu.pipeline_mode<synchronous>, transform_indices = @transform_4, window_bounds = array<i64: 1, 256>}, {pipeline_mode = #tpu.pipeline_mode<synchronous>, transform_indices = @transform_5, window_bounds = array<i64: 256, 128>}, {pipeline_mode = #tpu.pipeline_mode<synchronous>, transform_indices = @transform_6, window_bounds = array<i64: 1, 128>}, {transform_indices = @transform_7, window_bounds = array<i64: 8, 128>}]} {
    %c0 = arith.constant 0 : index
    %c0_0 = arith.constant 0 : index
    %0 = vector.load %arg1[%c0, %c0_0] : memref<8x128xf32, #tpu.memory_space<vmem>>, vector<8x128xf32>
    %c0_1 = arith.constant 0 : index
    %c0_2 = arith.constant 0 : index
    %1 = vector.load %arg3[%c0_1, %c0_2] : memref<128x256xf32, #tpu.memory_space<vmem>>, vector<128x256xf32>
    %cst = arith.constant dense<0.000000e+00> : vector<8x256xf32>
    %2 = tpu.matmul %0, %1, %cst {dimension_numbers = #tpu.dot_dimension_numbers<[1], [0], [0], [1], [0, 0, 1, 1], [], []>} : vector<8x128xf32>, vector<128x256xf32>, vector<8x256xf32> -> vector<8x256xf32>
    %c0_3 = arith.constant 0 : index
    %c0_4 = arith.constant 0 : index
    %3 = vector.load %arg2[%c0_3, %c0_4] : memref<8x8xf32, #tpu.memory_space<vmem>>, vector<8x8xf32>
    %c0_5 = arith.constant 0 : index
    %c0_6 = arith.constant 0 : index
    %4 = vector.load %arg4[%c0_5, %c0_6] : memref<8x256xf32, #tpu.memory_space<vmem>>, vector<8x256xf32>
    %cst_7 = arith.constant dense<0.000000e+00> : vector<8x256xf32>
    %5 = tpu.matmul %3, %4, %cst_7 {dimension_numbers = #tpu.dot_dimension_numbers<[1], [0], [0], [1], [0, 0, 1, 1], [], []>} : vector<8x8xf32>, vector<8x256xf32>, vector<8x256xf32> -> vector<8x256xf32>
    %6 = arith.addf %2, %5 : vector<8x256xf32>
    %c0_8 = arith.constant 0 : index
    %c0_9 = arith.constant 0 : index
    %7 = vector.load %arg5[%c0_8, %c0_9] : memref<1x256xf32, #tpu.memory_space<vmem>>, vector<1x256xf32>
    %8 = vector.broadcast %7 : vector<1x256xf32> to vector<8x256xf32>
    %9 = arith.addf %6, %8 : vector<8x256xf32>
    %cst_10 = arith.constant 0.000000e+00 : f32
    %10 = vector.broadcast %cst_10 : f32 to vector<8x256xf32>
    %11 = arith.maximumf %9, %10 : vector<8x256xf32>
    %c0_11 = arith.constant 0 : index
    %c0_12 = arith.constant 0 : index
    %12 = vector.load %arg6[%c0_11, %c0_12] : memref<256x128xf32, #tpu.memory_space<vmem>>, vector<256x128xf32>
    %cst_13 = arith.constant dense<0.000000e+00> : vector<8x128xf32>
    %13 = tpu.matmul %11, %12, %cst_13 {dimension_numbers = #tpu.dot_dimension_numbers<[1], [0], [0], [1], [0, 0, 1, 1], [], []>} : vector<8x256xf32>, vector<256x128xf32>, vector<8x128xf32> -> vector<8x128xf32>
    %c0_14 = arith.constant 0 : index
    %c0_15 = arith.constant 0 : index
    %14 = vector.load %arg7[%c0_14, %c0_15] : memref<1x128xf32, #tpu.memory_space<vmem>>, vector<1x128xf32>
    %15 = vector.broadcast %14 : vector<1x128xf32> to vector<8x128xf32>
    %16 = arith.addf %13, %15 : vector<8x128xf32>
    %c0_16 = arith.constant 0 : index
    %c0_17 = arith.constant 0 : index
    %17 = vector.load %arg8[%c0_16, %c0_17] : memref<8x128xf32, #tpu.memory_space<vmem>>, vector<8x128xf32>
    tpu.vector_store %arg8[%c0_16, %c0_17], %16 {strides = array<i32>} : memref<8x128xf32, #tpu.memory_space<vmem>>, vector<8x128xf32>,
    return
  }
  func.func @transform_0(%arg0: i32) -> (i32, i32) {
    %c0_i32 = arith.constant 0 : i32
    %c0_i32_0 = arith.constant 0 : i32
    return %arg0, %c0_i32 : i32, i32
  }
  func.func @transform_1(%arg0: i32) -> (i32, i32) {
    %c0_i32 = arith.constant 0 : i32
    %c0_i32_0 = arith.constant 0 : i32
    return %arg0, %c0_i32 : i32, i32
  }
  func.func @transform_2(%arg0: i32) -> (i32, i32) {
    %c0_i32 = arith.constant 0 : i32
    %c0_i32_0 = arith.constant 0 : i32
    %c0_i32_1 = arith.constant 0 : i32
    return %c0_i32, %c0_i32_0 : i32, i32
  }
  func.func @transform_3(%arg0: i32) -> (i32, i32) {
    %c0_i32 = arith.constant 0 : i32
    %c0_i32_0 = arith.constant 0 : i32
    %c0_i32_1 = arith.constant 0 : i32
    return %c0_i32, %c0_i32_0 : i32, i32
  }
  func.func @transform_4(%arg0: i32) -> (i32, i32) {
    %c0_i32 = arith.constant 0 : i32
    %c0_i32_0 = arith.constant 0 : i32
    %c0_i32_1 = arith.constant 0 : i32
    return %c0_i32, %c0_i32_0 : i32, i32
  }
  func.func @transform_5(%arg0: i32) -> (i32, i32) {
    %c0_i32 = arith.constant 0 : i32
    %c0_i32_0 = arith.constant 0 : i32
    %c0_i32_1 = arith.constant 0 : i32
    return %c0_i32, %c0_i32_0 : i32, i32
  }
  func.func @transform_6(%arg0: i32) -> (i32, i32) {
    %c0_i32 = arith.constant 0 : i32
    %c0_i32_0 = arith.constant 0 : i32
    %c0_i32_1 = arith.constant 0 : i32
    return %c0_i32, %c0_i32_0 : i32, i32
  }
  func.func @transform_7(%arg0: i32) -> (i32, i32) {
    %c0_i32 = arith.constant 0 : i32
    %c0_i32_0 = arith.constant 0 : i32
    return %arg0, %c0_i32 : i32, i32
  }
}

</mosaic_0001>

<bundles_post_ra>
// kernel: tpu_custom_call.1
= control target key start
LH: loop header
LB: loop body
LE: loop exit
PB: predicated region body
PF: predicated region fallthrough
CT: control target
= control target key end

     0   :  { %12 = vsyncpa [#allocation3], 0  ;;  %s804_s0 = inlined_call_operand.hbm [shape: f32[8,128], index: 0, kind: input, shape index: {}]   ;;  %s805_s1 = inlined_call_operand.hbm [shape: f32[8,8], index: 1, kind: input, shape index: {}]   ;;  %s806_s2 = inlined_call_operand.hbm [shape: f32[128,256], index: 2, kind: input, shape index: {}]   ;;  %s807_s3 = inlined_call_operand.hbm [shape: f32[8,256], index: 3, kind: input, shape index: {}]   ;;  %s808_s4 = inlined_call_operand.vmem [shape: f32[1,256], index: 4, kind: input, shape index: {}]   ;;  %s809_s5 = inlined_call_operand.hbm [shape: f32[256,128], index: 5, kind: input, shape index: {}]   ;;  %s810_s6 = inlined_call_operand.vmem [shape: f32[1,128], index: 6, kind: input, shape index: {}]   ;;  %s811_s7 = inlined_call_operand.hbm [shape: f32[8,128], index: 7, kind: output, shape index: {}]  }
   0x1   :  { %13 = vsyncpa [#allocation6], 0 }
   0x2   :  { %14 = vsyncpa [#allocation9], 0 }
   0x3   :  { %15 = vsyncpa [#allocation4], 0  ;;  %s668_s24 = smov [#allocation5]   ;;  %s669_s26 = smov [#allocation8]  }
   0x4   :  { %s32_s25 = sshll.u32 %s668_s24, 4  ;;  %s54_s27 = sshll.u32 %s669_s26, 4  ;;  %s33_s25 = int_to_ptr.vmem [resolvable:$true] %s32_s25  ;;  %s55_s27 = int_to_ptr.vmem [resolvable:$true] %s54_s27 }
   0x5   :  { %s528_s30 = scalar_lea.hbm %s805_s1, 128 }
   0x6   :  { %p529_p0 = scmp.ne.s32.totalorder %s805_s1, %s528_s30  ;;  %p532_p1 = scmp.lt.u32.totalorder %s528_s30, %s805_s1 }
   0x8   :  { %p534_p2 = pnand %p532_p1, %p529_p0 }
   0xa   :  { %537 = shalt.err (!%p534_p2)
}
   0xb   :  { %s538_s12 = scalar_lea.vmem %s33_s25, 128  ;;  %p543_p4 = scmp.lt.s32.totalorder %s33_s25, %s33_s25 }
   0xc   :  { %p539_p3 = scmp.ne.s32.totalorder %s33_s25, %s538_s12  ;;  %p544_p5 = scmp.lt.s32.totalorder %s538_s12, %s538_s12 }
   0xe   :  { %p545_p6 = por %p544_p5, %p543_p4 }
  0x10   :  { %p546_p7 = pnand %p545_p6, %p539_p3 }
  0x12   :  { %549 = shalt.err (!%p546_p7)
}
  0x13   :  { %35 = dma.hbm_to_vmem [thread:$0]  %s805_s1, 128, %s33_s25, [#allocation6]  }
  0x14   :  { %s550_s17 = scalar_lea.hbm %s807_s3, 256 }
  0x15   :  { %p551_p8 = scmp.ne.s32.totalorder %s807_s3, %s550_s17  ;;  %p554_p9 = scmp.lt.u32.totalorder %s550_s17, %s807_s3 }
  0x17   :  { %p556_p10 = pnand %p554_p9, %p551_p8 }
  0x19   :  { %559 = shalt.err (!%p556_p10)
}
  0x1a   :  { %s560_s22 = scalar_lea.vmem %s55_s27, 256  ;;  %p565_p12 = scmp.lt.s32.totalorder %s55_s27, %s55_s27 }
  0x1b   :  { %p561_p11 = scmp.ne.s32.totalorder %s55_s27, %s560_s22  ;;  %p566_p13 = scmp.lt.s32.totalorder %s560_s22, %s560_s22 }
  0x1d   :  { %p567_p0 = por %p566_p13, %p565_p12 }
  0x1f   :  { %p568_p1 = pnand %p567_p0, %p561_p11 }
  0x21   :  { %571 = shalt.err (!%p568_p1)
}
  0x22   :  { %57 = dma.hbm_to_vmem [thread:$0]  %s807_s3, 256, %s55_s27, [#allocation9]  }
  0x23   :  { %s670_s24 = smov [#allocation2]   ;;  %s671_s26 = smov [#allocation7]  }
  0x24   :  { %s22_s25 = sshll.u32 %s670_s24, 4  ;;  %s41_s28 = sshll.u32 %s671_s26, 4  ;;  %s23_s25 = int_to_ptr.vmem [resolvable:$true] %s22_s25  ;;  %s743_s28 = int_to_ptr.vmem [resolvable:$true] %s41_s28 }
  0x25   :  { %s572_s8 = scalar_lea.hbm %s804_s0, 128 }
  0x26   :  { %p573_p2 = scmp.ne.s32.totalorder %s804_s0, %s572_s8  ;;  %p576_p3 = scmp.lt.u32.totalorder %s572_s8, %s804_s0 }
  0x28   :  { %p578_p4 = pnand %p576_p3, %p573_p2 }
  0x2a   :  { %581 = shalt.err (!%p578_p4)
}
  0x2b   :  { %s582_s3 = scalar_lea.vmem %s23_s25, 128  ;;  %p587_p6 = scmp.lt.s32.totalorder %s23_s25, %s23_s25 }
  0x2c   :  { %p583_p5 = scmp.ne.s32.totalorder %s23_s25, %s582_s3  ;;  %p588_p7 = scmp.lt.s32.totalorder %s582_s3, %s582_s3 }
  0x2e   :  { %p589_p8 = por %p588_p7, %p587_p6 }
  0x30   :  { %p590_p9 = pnand %p589_p8, %p583_p5 }
  0x32   :  { %593 = shalt.err (!%p590_p9)
}
  0x33   :  { %25 = dma.hbm_to_vmem [thread:$0]  %s804_s0, 128, %s23_s25, [#allocation3]  }
  0x34   :  { %s594_s16 = scalar_lea.hbm %s806_s2, 4096 }
  0x35   :  { %p595_p10 = scmp.ne.s32.totalorder %s806_s2, %s594_s16  ;;  %p598_p11 = scmp.lt.u32.totalorder %s594_s16, %s806_s2 }
  0x37   :  { %p600_p12 = pnand %p598_p11, %p595_p10 }
  0x39   :  { %603 = shalt.err (!%p600_p12)
}
  0x3a   :  { %s604_s21 = scalar_lea.vmem %s743_s28, 4096  ;;  %p609_p0 = scmp.lt.s32.totalorder %s743_s28, %s743_s28 }
  0x3b   :  { %p605_p13 = scmp.ne.s32.totalorder %s743_s28, %s604_s21  ;;  %p610_p1 = scmp.lt.s32.totalorder %s604_s21, %s604_s21 }
  0x3d   :  { %p611_p2 = por %p610_p1, %p609_p0 }
  0x3f   :  { %p612_p3 = pnand %p611_p2, %p605_p13 }
  0x41   :  { %615 = shalt.err (!%p612_p3)
}
  0x42   :  { %s672_s0 = smov 256   ;;  %s673_s22 = smov 16  }
  0x43   :  { %47 = dma.hbm_to_vmem [thread:$0]  %s806_s2, 4096, %s743_s28, [#allocation6], %s672_s0, %s672_s0, %s673_s22  }
  0x44   :  { %s674_s24 = smov [#allocation10]   ;;  %s616_s30 = scalar_lea.hbm %s809_s5, 4096 }
  0x45   :  { %s65_s25 = sshll.u32 %s674_s24, 4  ;;  %p617_p4 = scmp.ne.s32.totalorder %s809_s5, %s616_s30  ;;  %s66_s25 = int_to_ptr.vmem [resolvable:$true] %s65_s25 }
  0x46   :  { %p620_p5 = scmp.lt.u32.totalorder %s616_s30, %s809_s5 }
  0x48   :  { %p622_p6 = pnand %p620_p5, %p617_p4 }
  0x4a   :  { %625 = shalt.err (!%p622_p6)
}
  0x4b   :  { %s626_s12 = scalar_lea.vmem %s66_s25, 4096  ;;  %p631_p8 = scmp.lt.s32.totalorder %s66_s25, %s66_s25 }
  0x4c   :  { %p627_p7 = scmp.ne.s32.totalorder %s66_s25, %s626_s12  ;;  %p632_p9 = scmp.lt.s32.totalorder %s626_s12, %s626_s12 }
  0x4e   :  { %p633_p10 = por %p632_p9, %p631_p8 }
  0x50   :  { %p634_p11 = pnand %p633_p10, %p627_p7 }
  0x52   :  { %637 = shalt.err (!%p634_p11)
}
  0x53   :  { %s675_s2 = smov 128   ;;  %s676_s28 = smov 8  }
  0x54   :  { %71 = dma.hbm_to_vmem [thread:$0]  %s809_s5, 4096, %s66_s25, [#allocation9], %s675_s2, %s675_s2, %s676_s28  }
  0x55   :  { %660 = dma.done.wait [#allocation3], 128  }
  0x56   :  { %661 = vsyncadd [#allocation3], 4294967168 }
  0x57   :  { %662 = dma.done.wait [#allocation6], 4224  }
  0x58   :  { %663 = vsyncadd [#allocation6], 4294963072 }
  0x59   :  { %664 = dma.done.wait [#allocation9], 4352  }
  0x5a   :  { %665 = vsyncadd [#allocation9], 4294962944  ;;  %v677_v0 = vmov 0.0   ;;  %v124_v1 = vld [vmem:[#allocation8 + $0x8] sm:$0xff]  ;;  %v123_v2 = vld [vmem:[#allocation8] sm:$0xff]  ;;  %vm125_vm0 = vcmask 64512  }
  0x5b   :  { %193 = vmatprep.mubr.f32.mxu0 %v677_v0  ;;  %v91_v3 = vld [vmem:[#allocation7 + $0x8] sm:$0xff]  ;;  %129 = vmatprep.subr.mxu0 %v124_v1  ;;  %v93_v4 = vld [vmem:[#allocation7 + $0x18] sm:$0xff]  ;;  %v90_v6 = vld [vmem:[#allocation7] sm:$0xff]  ;;  %s678_s16 = smov [#allocation11]  }
  0x5c   :  { %v122_v5 = vld [vmem:[#allocation5] sm:$0xff]  ;;  %130 = vmatpush1.msra.mxu0 %v123_v2  ;;  %v451_v7 = vpack.c.bf16 %v93_v4, %v91_v3  ;;  %v92_v8 = vld [vmem:[#allocation7 + $0x10] sm:$0xff]  ;;  %v95_v9 = vld [vmem:[#allocation7 + $0x28] sm:$0xff]  ;;  %s403_s17 = sshll.u32 %s678_s16, 4  ;;  %s404_s17 = int_to_ptr.vmem [resolvable:$true] %s403_s17 }
  0x5d   :  { %v97_v10 = vld [vmem:[#allocation7 + $0x38] sm:$0xff]  ;;  %414 = vmatmul.mubr.msk.f32.vlgmr.msra.gmra.mrb[0].mxu0 %vm125_vm0, %v122_v5  ;;  %v453_v11 = vpack.c.bf16 %v92_v8, %v90_v6  ;;  %v94_v13 = vld [vmem:[#allocation7 + $0x20] sm:$0xff]  ;;  %v96_v14 = vld [vmem:[#allocation7 + $0x30] sm:$0xff]  ;;  %p643_p13 = scmp.lt.s32.totalorder %s404_s17, %s404_s17 }
  0x5e   :  { %v455_v12 = vpack.c.bf16 %v97_v10, %v95_v9  ;;  %v99_v15 = vld [vmem:[#allocation7 + $0x48] sm:$0xff]  ;;  %452 = vmatprep.subr.bf16.mxu0 %v451_v7  ;;  %v101_v16 = vld [vmem:[#allocation7 + $0x58] sm:$0xff]  ;;  %264 = vmatprep.mubr.f32.mxu0 %v677_v0  ;;  %v457_v17 = vpack.c.bf16 %v96_v14, %v94_v13  ;;  %v98_v19 = vld [vmem:[#allocation7 + $0x40] sm:$0xff] }
  0x5f   :  { %454 = vmatpush1.bf16.msra.mxu0 %v453_v11  ;;  %v459_v18 = vpack.c.bf16 %v101_v16, %v99_v15  ;;  %v100_v20 = vld [vmem:[#allocation7 + $0x50] sm:$0xff]  ;;  %v103_v21 = vld [vmem:[#allocation7 + $0x68] sm:$0xff]  ;;  %v105_v22 = vld [vmem:[#allocation7 + $0x78] sm:$0xff] }
  0x60   :  { %456 = vmatprep.subr.bf16.mxu0 %v455_v12  ;;  %v461_v23 = vpack.c.bf16 %v100_v20, %v98_v19  ;;  %v463_v24 = vpack.c.bf16 %v105_v22, %v103_v21  ;;  %v102_v25 = vld [vmem:[#allocation7 + $0x60] sm:$0xff]  ;;  %v104_v26 = vld [vmem:[#allocation7 + $0x70] sm:$0xff]  ;;  %v107_v27 = vld [vmem:[#allocation7 + $0x88] sm:$0xff] }
  0x61   :  { %v109_v28 = vld [vmem:[#allocation7 + $0x98] sm:$0xff]  ;;  %v106_v29 = vld [vmem:[#allocation7 + $0x80] sm:$0xff]  ;;  %v108_v30 = vld [vmem:[#allocation7 + $0x90] sm:$0xff]  ;;  %v465_v34 = vpack.c.bf16 %v104_v26, %v102_v25 }
  0x62   :  { %v303_v31 = vld [vmem:[#allocation10 + $0x80] sm:$0xff]  ;;  %v304_v32 = vld [vmem:[#allocation10 + $0x88] sm:$0xff]  ;;  %v305_v37 = vld [vmem:[#allocation10 + $0x90] sm:$0xff]  ;;  %v467_v39 = vpack.c.bf16 %v109_v28, %v107_v27  ;;  %v469_v49 = vpack.c.bf16 %v108_v30, %v106_v29 }
  0x63   :  { %458 = vmatpush1.bf16.msra.mxu0 %v457_v17  ;;  %v287_v33 = vld [vmem:[#allocation10] sm:$0xff]  ;;  %v483_v35 = vpack.c.bf16 %v304_v32, %v303_v31  ;;  %v288_v36 = vld [vmem:[#allocation10 + $0x8] sm:$0xff]  ;;  %v306_v38 = vld [vmem:[#allocation10 + $0x98] sm:$0xff] }
  0x64   :  { %460 = vmatprep.subr.bf16.mxu0 %v459_v18  ;;  %v485_v40 = vpack.c.bf16 %v288_v36, %v287_v33  ;;  %v487_v41 = vpack.c.bf16 %v306_v38, %v305_v37  ;;  %v289_v42 = vld [vmem:[#allocation10 + $0x10] sm:$0xff]  ;;  %v290_v43 = vld [vmem:[#allocation10 + $0x18] sm:$0xff]  ;;  %v307_v44 = vld [vmem:[#allocation10 + $0xa0] sm:$0xff]  ;;  %v273_v37 = vlaneseq }
  0x65   :  { %v111_v45 = vld [vmem:[#allocation7 + $0xa8] sm:$0xff]  ;;  %v113_v46 = vld [vmem:[#allocation7 + $0xb8] sm:$0xff]  ;;  %484 = vmatprep.subr.bf16.mxu1 %v483_v35  ;;  %v489_v48 = vpack.c.bf16 %v290_v43, %v289_v42  ;;  %v110_v50 = vld [vmem:[#allocation7 + $0xa0] sm:$0xff] }
  0x66   :  { %v308_v47 = vld [vmem:[#allocation10 + $0xa8] sm:$0xff]  ;;  %486 = vmatpush3.bf16.msra.mxu1 %v485_v40  ;;  %v291_v52 = vld [vmem:[#allocation10 + $0x20] sm:$0xff]  ;;  %v471_v54 = vpack.c.bf16 %v113_v46, %v111_v45  ;;  %v309_v56 = vld [vmem:[#allocation10 + $0xb0] sm:$0xff]  ;;  %v274_v38 = vshrl.u32 %v273_v37, 7 }
  0x67   :  { %462 = vmatpush1.bf16.msra.mxu0 %v461_v23  ;;  %488 = vmatprep.subr.bf16.mxu1 %v487_v41  ;;  %v491_v51 = vpack.c.bf16 %v308_v47, %v307_v44  ;;  %v292_v53 = vld [vmem:[#allocation10 + $0x28] sm:$0xff]  ;;  %v112_v55 = vld [vmem:[#allocation7 + $0xb0] sm:$0xff]  ;;  %v310_v57 = vld [vmem:[#allocation10 + $0xb8] sm:$0xff] }
  0x68   :  { %464 = vmatprep.subr.bf16.mxu0 %v463_v24  ;;  %v115_v58 = vld [vmem:[#allocation7 + $0xc8] sm:$0xff]  ;;  %v117_v59 = vld [vmem:[#allocation7 + $0xd8] sm:$0xff]  ;;  %v493_v60 = vpack.c.bf16 %v292_v53, %v291_v52  ;;  %v473_v61 = vpack.c.bf16 %v112_v55, %v110_v50  ;;  %v114_v62 = vld [vmem:[#allocation7 + $0xc0] sm:$0xff]  ;;  %v495_v63 = vpack.c.bf16 %v310_v57, %v309_v56  ;;  %v279_v41 = vsub.s32 1, %v274_v38 }
  0x69   :  { %v293_v0 = vld [vmem:[#allocation10 + $0x30] sm:$0xff]  ;;  %v294_v1 = vld [vmem:[#allocation10 + $0x38] sm:$0xff]  ;;  %v475_v2 = vpack.c.bf16 %v117_v59, %v115_v58  ;;  %v116_v3 = vld [vmem:[#allocation7 + $0xd0] sm:$0xff] }
  0x6a   :  { %490 = vmatpush3.bf16.msra.mxu1 %v489_v48  ;;  %v311_v4 = vld [vmem:[#allocation10 + $0xc0] sm:$0xff]  ;;  %v312_v5 = vld [vmem:[#allocation10 + $0xc8] sm:$0xff]  ;;  %v119_v6 = vld [vmem:[#allocation7 + $0xe8] sm:$0xff]  ;;  %v497_v8 = vpack.c.bf16 %v294_v1, %v293_v0  ;;  %v477_v9 = vpack.c.bf16 %v116_v3, %v114_v62 }
  0x6b   :  { %466 = vmatpush1.bf16.msra.mxu0 %v465_v34  ;;  %492 = vmatprep.subr.bf16.mxu1 %v491_v51  ;;  %v121_v7 = vld [vmem:[#allocation7 + $0xf8] sm:$0xff]  ;;  %v118_v10 = vld [vmem:[#allocation7 + $0xe0] sm:$0xff]  ;;  %v499_v11 = vpack.c.bf16 %v312_v5, %v311_v4  ;;  %v295_v12 = vld [vmem:[#allocation10 + $0x40] sm:$0xff] }
  0x6c   :  { %468 = vmatprep.subr.bf16.mxu0 %v467_v39  ;;  %v296_v13 = vld [vmem:[#allocation10 + $0x48] sm:$0xff]  ;;  %v479_v14 = vpack.c.bf16 %v121_v7, %v119_v6  ;;  %v120_v15 = vld [vmem:[#allocation7 + $0xf0] sm:$0xff]  ;;  %v313_v16 = vld [vmem:[#allocation10 + $0xd0] sm:$0xff]  ;;  %v275_v39 = vsub.s32 0, %v274_v38 }
  0x6d   :  { %v314_v17 = vld [vmem:[#allocation10 + $0xd8] sm:$0xff]  ;;  %v501_v18 = vpack.c.bf16 %v296_v13, %v295_v12  ;;  %v481_v19 = vpack.c.bf16 %v120_v15, %v118_v10  ;;  %v297_v21 = vld [vmem:[#allocation10 + $0x50] sm:$0xff]  ;;  %v315_v23 = vld [vmem:[#allocation10 + $0xe0] sm:$0xff] }
  0x6e   :  { %494 = vmatpush3.bf16.msra.mxu1 %v493_v60  ;;  %v503_v20 = vpack.c.bf16 %v314_v17, %v313_v16  ;;  %v298_v22 = vld [vmem:[#allocation10 + $0x58] sm:$0xff]  ;;  %v316_v24 = vld [vmem:[#allocation10 + $0xe8] sm:$0xff]  ;;  %v89_v26 = vld [vmem:[#allocation2] sm:$0xff] }
  0x6f   :  { %470 = vmatpush1.bf16.msra.mxu0 %v469_v49  ;;  %496 = vmatprep.subr.bf16.mxu1 %v495_v63  ;;  %v505_v25 = vpack.c.bf16 %v298_v22, %v297_v21  ;;  %v507_v27 = vpack.c.bf16 %v316_v24, %v315_v23  ;;  %v299_v28 = vld [vmem:[#allocation10 + $0x60] sm:$0xff]  ;;  %v300_v29 = vld [vmem:[#allocation10 + $0x68] sm:$0xff]  ;;  %v317_v31 = vld [vmem:[#allocation10 + $0xf0] sm:$0xff] }
  0x70   :  { %472 = vmatprep.subr.bf16.mxu0 %v471_v54  ;;  %v509_v30 = vpack.c.bf16 %v300_v29, %v299_v28  ;;  %v318_v32 = vld [vmem:[#allocation10 + $0xf8] sm:$0xff]  ;;  %v301_v34 = vld [vmem:[#allocation10 + $0x70] sm:$0xff]  ;;  %v271_v40 = vld [vmem:[%s808_s4] sm:$0x3]  ;;  %s638_s4 = scalar_lea.vmem %s404_s17, 128 }
  0x71   :  { %v511_v33 = vpack.c.bf16 %v318_v32, %v317_v31  ;;  %v302_v35 = vld [vmem:[#allocation10 + $0x78] sm:$0xff]  ;;  %v276_v42 = vrot.slane %v271_v40, %v275_v39  ;;  %v280_v43 = vrot.slane %v271_v40, %v279_v41  ;;  %v415_v51 = vld [vmem:[%s810_s6] ss:$0 sm:$0xff]  ;;  %p639_p12 = scmp.ne.s32.totalorder %s404_s17, %s638_s4  ;;  %p644_p0 = scmp.lt.s32.totalorder %s638_s4, %s638_s4 }
  0x72   :  { %498 = vmatpush3.bf16.msra.mxu1 %v497_v8  ;;  %v513_v36 = vpack.c.bf16 %v302_v35, %v301_v34 }
  0x73   :  { %474 = vmatpush1.bf16.msra.mxu0 %v473_v61  ;;  %500 = vmatprep.subr.bf16.mxu1 %v499_v11  ;;  %p645_p1 = por %p644_p0, %p643_p13 }
  0x74   :  { %476 = vmatprep.subr.bf16.mxu0 %v475_v2 }
  0x75   :  { %p646_p2 = pnand %p645_p1, %p639_p12 }
  0x76   :  { %502 = vmatpush3.bf16.msra.mxu1 %v501_v18 }
  0x77   :  { %478 = vmatpush1.bf16.msra.mxu0 %v477_v9  ;;  %504 = vmatprep.subr.bf16.mxu1 %v503_v20 }
  0x78   :  { %480 = vmatprep.subr.bf16.mxu0 %v479_v14 }
  0x7a   :  { %506 = vmatpush3.bf16.msra.mxu1 %v505_v25 }
  0x7b   :  { %482 = vmatpush1.bf16.msra.mxu0 %v481_v19  ;;  %508 = vmatprep.subr.bf16.mxu1 %v507_v27 }
  0x7e   :  { %265 = vmatmul.mubr.f32.vlgmr.msra.gmra.mrb[0].mxu0 %v89_v26  ;;  %510 = vmatpush3.bf16.msra.mxu1 %v509_v30 }
  0x7f   :  { %512 = vmatprep.subr.bf16.mxu1 %v511_v33 }
  0x82   :  { %514 = vmatpush3.bf16.msra.mxu1 %v513_v36 }
 0x151   :  { %v266_v44 = vpop.f32.mrb[0].mxu0 }
 0x152   :  { %v283_v45 = vadd.f32 %v276_v42, %v266_v44  ;;  %v268_v46 = vpop.f32.mrb[1].mxu0 }
 0x153   :  { %v284_v47 = vadd.f32 %v280_v43, %v268_v46 }
 0x154   :  { %v285_v49 = vmax.f32 %v283_v45, 0.0 }
 0x155   :  { %v286_v48 = vmax.f32 %v284_v47, 0.0 }
 0x157   :  { %390 = vmatprep.mubr.f32.mxu1 %v286_v48 }
 0x158   :  { %391 = vmatmul.mubr.f32.vlgmr.msra.gmra.mrb[0].mxu1 %v285_v49 }
 0x22b   :  { %v448_v50 = vpop.f32.mrb[0].mxu1 }
 0x22c   :  { %v449_v52 = vpop.f32.mrb[1].mxu1 }
 0x22d   :  { %v450_v53 = vadd.f32 %v449_v52, %v448_v50 }
 0x22f   :  { %v393_v54 = vadd.f32 %v450_v53, %v415_v51 }
 0x231   :  { %396 = vst [vmem:[#allocation11] sm:$0xff] %v393_v54 }
 0x232   :  { %649 = shalt.err (!%p646_p2)
}
 0x233   :  { %s650_s20 = scalar_lea.hbm %s811_s7, 128 }
 0x234   :  { %p651_p3 = scmp.ne.s32.totalorder %s811_s7, %s650_s20  ;;  %p654_p4 = scmp.lt.u32.totalorder %s650_s20, %s811_s7 }
 0x236   :  { %p656_p5 = pnand %p654_p4, %p651_p3 }
 0x238   :  { %659 = shalt.err (!%p656_p5)
}
 0x239   :  { %406 = dma.vmem_to_hbm [thread:$0]  %s404_s17, 128, %s811_s7, [#allocation4]  }
 0x23a   :  { %666 = dma.done.wait [#allocation4], 128  }
 0x23b   :  { %667 = vsyncadd [#allocation4], 4294967168 }
 0x23c   :  { %410 = vsyncpa [#allocation3], 1 }
 0x23d   :  { %411 = vsyncpa [#allocation6], 1 }
 0x23e   :  { %412 = vsyncpa [#allocation9], 1 }
 0x23f   :  { %413 = vsyncpa [#allocation4], 1 }

// kernel: tpu_custom_call.1
= control target key start
LH: loop header
LB: loop body
LE: loop exit
PB: predicated region body
PF: predicated region fallthrough
CT: control target
= control target key end

     0   :  { %12 = vsyncpa [#allocation3], 0  ;;  %s804_s0 = inlined_call_operand.hbm [shape: f32[8,128], index: 0, kind: input, shape index: {}]   ;;  %s805_s1 = inlined_call_operand.hbm [shape: f32[8,8], index: 1, kind: input, shape index: {}]   ;;  %s806_s2 = inlined_call_operand.hbm [shape: f32[128,256], index: 2, kind: input, shape index: {}]   ;;  %s807_s3 = inlined_call_operand.hbm [shape: f32[8,256], index: 3, kind: input, shape index: {}]   ;;  %s808_s4 = inlined_call_operand.vmem [shape: f32[1,256], index: 4, kind: input, shape index: {}]   ;;  %s809_s5 = inlined_call_operand.hbm [shape: f32[256,128], index: 5, kind: input, shape index: {}]   ;;  %s810_s6 = inlined_call_operand.vmem [shape: f32[1,128], index: 6, kind: input, shape index: {}]   ;;  %s811_s7 = inlined_call_operand.hbm [shape: f32[8,128], index: 7, kind: output, shape index: {}]  }
   0x1   :  { %13 = vsyncpa [#allocation6], 0 }
   0x2   :  { %14 = vsyncpa [#allocation9], 0 }
   0x3   :  { %15 = vsyncpa [#allocation4], 0  ;;  %s668_s24 = smov [#allocation5]   ;;  %s669_s26 = smov [#allocation8]  }
   0x4   :  { %s32_s25 = sshll.u32 %s668_s24, 4  ;;  %s54_s27 = sshll.u32 %s669_s26, 4  ;;  %s33_s25 = int_to_ptr.vmem [resolvable:$true] %s32_s25  ;;  %s55_s27 = int_to_ptr.vmem [resolvable:$true] %s54_s27 }
   0x5   :  { %s528_s30 = scalar_lea.hbm %s805_s1, 128 }
   0x6   :  { %p529_p0 = scmp.ne.s32.totalorder %s805_s1, %s528_s30  ;;  %p532_p1 = scmp.lt.u32.totalorder %s528_s30, %s805_s1 }
   0x8   :  { %p534_p2 = pnand %p532_p1, %p529_p0 }
   0xa   :  { %537 = shalt.err (!%p534_p2)
}
   0xb   :  { %s538_s12 = scalar_lea.vmem %s33_s25, 128  ;;  %p543_p4 = scmp.lt.s32.totalorder %s33_s25, %s33_s25 }
   0xc   :  { %p539_p3 = scmp.ne.s32.totalorder %s33_s25, %s538_s12  ;;  %p544_p5 = scmp.lt.s32.totalorder %s538_s12, %s538_s12 }
   0xe   :  { %p545_p6 = por %p544_p5, %p543_p4 }
  0x10   :  { %p546_p7 = pnand %p545_p6, %p539_p3 }
  0x12   :  { %549 = shalt.err (!%p546_p7)
}
  0x13   :  { %35 = dma.hbm_to_vmem [thread:$0]  %s805_s1, 128, %s33_s25, [#allocation6]  }
  0x14   :  { %s550_s17 = scalar_lea.hbm %s807_s3, 256 }
  0x15   :  { %p551_p8 = scmp.ne.s32.totalorder %s807_s3, %s550_s17  ;;  %p554_p9 = scmp.lt.u32.totalorder %s550_s17, %s807_s3 }
  0x17   :  { %p556_p10 = pnand %p554_p9, %p551_p8 }
  0x19   :  { %559 = shalt.err (!%p556_p10)
}
  0x1a   :  { %s560_s22 = scalar_lea.vmem %s55_s27, 256  ;;  %p565_p12 = scmp.lt.s32.totalorder %s55_s27, %s55_s27 }
  0x1b   :  { %p561_p11 = scmp.ne.s32.totalorder %s55_s27, %s560_s22  ;;  %p566_p13 = scmp.lt.s32.totalorder %s560_s22, %s560_s22 }
  0x1d   :  { %p567_p0 = por %p566_p13, %p565_p12 }
  0x1f   :  { %p568_p1 = pnand %p567_p0, %p561_p11 }
  0x21   :  { %571 = shalt.err (!%p568_p1)
}
  0x22   :  { %57 = dma.hbm_to_vmem [thread:$0]  %s807_s3, 256, %s55_s27, [#allocation9]  }
  0x23   :  { %s670_s24 = smov [#allocation2]   ;;  %s671_s26 = smov [#allocation7]  }
  0x24   :  { %s22_s25 = sshll.u32 %s670_s24, 4  ;;  %s41_s28 = sshll.u32 %s671_s26, 4  ;;  %s23_s25 = int_to_ptr.vmem [resolvable:$true] %s22_s25  ;;  %s743_s28 = int_to_ptr.vmem [resolvable:$true] %s41_s28 }
  0x25   :  { %s572_s8 = scalar_lea.hbm %s804_s0, 128 }
  0x26   :  { %p573_p2 = scmp.ne.s32.totalorder %s804_s0, %s572_s8  ;;  %p576_p3 = scmp.lt.u32.totalorder %s572_s8, %s804_s0 }
  0x28   :  { %p578_p4 = pnand %p576_p3, %p573_p2 }
  0x2a   :  { %581 = shalt.err (!%p578_p4)
}
  0x2b   :  { %s582_s3 = scalar_lea.vmem %s23_s25, 128  ;;  %p587_p6 = scmp.lt.s32.totalorder %s23_s25, %s23_s25 }
  0x2c   :  { %p583_p5 = scmp.ne.s32.totalorder %s23_s25, %s582_s3  ;;  %p588_p7 = scmp.lt.s32.totalorder %s582_s3, %s582_s3 }
  0x2e   :  { %p589_p8 = por %p588_p7, %p587_p6 }
  0x30   :  { %p590_p9 = pnand %p589_p8, %p583_p5 }
  0x32   :  { %593 = shalt.err (!%p590_p9)
}
  0x33   :  { %25 = dma.hbm_to_vmem [thread:$0]  %s804_s0, 128, %s23_s25, [#allocation3]  }
  0x34   :  { %s594_s16 = scalar_lea.hbm %s806_s2, 4096 }
  0x35   :  { %p595_p10 = scmp.ne.s32.totalorder %s806_s2, %s594_s16  ;;  %p598_p11 = scmp.lt.u32.totalorder %s594_s16, %s806_s2 }
  0x37   :  { %p600_p12 = pnand %p598_p11, %p595_p10 }
  0x39   :  { %603 = shalt.err (!%p600_p12)
}
  0x3a   :  { %s604_s21 = scalar_lea.vmem %s743_s28, 4096  ;;  %p609_p0 = scmp.lt.s32.totalorder %s743_s28, %s743_s28 }
  0x3b   :  { %p605_p13 = scmp.ne.s32.totalorder %s743_s28, %s604_s21  ;;  %p610_p1 = scmp.lt.s32.totalorder %s604_s21, %s604_s21 }
  0x3d   :  { %p611_p2 = por %p610_p1, %p609_p0 }
  0x3f   :  { %p612_p3 = pnand %p611_p2, %p605_p13 }
  0x41   :  { %615 = shalt.err (!%p612_p3)
}
  0x42   :  { %s672_s0 = smov 256   ;;  %s673_s22 = smov 16  }
  0x43   :  { %47 = dma.hbm_to_vmem [thread:$0]  %s806_s2, 4096, %s743_s28, [#allocation6], %s672_s0, %s672_s0, %s673_s22  }
  0x44   :  { %s674_s24 = smov [#allocation10]   ;;  %s616_s30 = scalar_lea.hbm %s809_s5, 4096 }
  0x45   :  { %s65_s25 = sshll.u32 %s674_s24, 4  ;;  %p617_p4 = scmp.ne.s32.totalorder %s809_s5, %s616_s30  ;;  %s66_s25 = int_to_ptr.vmem [resolvable:$true] %s65_s25 }
  0x46   :  { %p620_p5 = scmp.lt.u32.totalorder %s616_s30, %s809_s5 }
  0x48   :  { %p622_p6 = pnand %p620_p5, %p617_p4 }
  0x4a   :  { %625 = shalt.err (!%p622_p6)
}
  0x4b   :  { %s626_s12 = scalar_lea.vmem %s66_s25, 4096  ;;  %p631_p8 = scmp.lt.s32.totalorder %s66_s25, %s66_s25 }
  0x4c   :  { %p627_p7 = scmp.ne.s32.totalorder %s66_s25, %s626_s12  ;;  %p632_p9 = scmp.lt.s32.totalorder %s626_s12, %s626_s12 }
  0x4e   :  { %p633_p10 = por %p632_p9, %p631_p8 }
  0x50   :  { %p634_p11 = pnand %p633_p10, %p627_p7 }
  0x52   :  { %637 = shalt.err (!%p634_p11)
}
  0x53   :  { %s675_s2 = smov 128   ;;  %s676_s28 = smov 8  }
  0x54   :  { %71 = dma.hbm_to_vmem [thread:$0]  %s809_s5, 4096, %s66_s25, [#allocation9], %s675_s2, %s675_s2, %s676_s28  }
  0x55   :  { %660 = dma.done.wait [#allocation3], 128  }
  0x56   :  { %661 = vsyncadd [#allocation3], 4294967168 }
  0x57   :  { %662 = dma.done.wait [#allocation6], 4224  }
  0x58   :  { %663 = vsyncadd [#allocation6], 4294963072 }
  0x59   :  { %664 = dma.done.wait [#allocation9], 4352  }
  0x5a   :  { %665 = vsyncadd [#allocation9], 4294962944  ;;  %v677_v0 = vmov 0.0   ;;  %v124_v1 = vld [vmem:[#allocation8 + $0x8] sm:$0xff]  ;;  %v123_v2 = vld [vmem:[#allocation8] sm:$0xff]  ;;  %vm125_vm0 = vcmask 64512  }
  0x5b   :  { %193 = vmatprep.mubr.f32.mxu0 %v677_v0  ;;  %v91_v3 = vld [vmem:[#allocation7 + $0x8] sm:$0xff]  ;;  %129 = vmatprep.subr.mxu0 %v124_v1  ;;  %v93_v4 = vld [vmem:[#allocation7 + $0x18] sm:$0xff]  ;;  %v90_v6 = vld [vmem:[#allocation7] sm:$0xff]  ;;  %s678_s16 = smov [#allocation11]  }
  0x5c   :  { %v122_v5 = vld [vmem:[#allocation5] sm:$0xff]  ;;  %130 = vmatpush1.msra.mxu0 %v123_v2  ;;  %v451_v7 = vpack.c.bf16 %v93_v4, %v91_v3  ;;  %v92_v8 = vld [vmem:[#allocation7 + $0x10] sm:$0xff]  ;;  %v95_v9 = vld [vmem:[#allocation7 + $0x28] sm:$0xff]  ;;  %s403_s17 = sshll.u32 %s678_s16, 4  ;;  %s404_s17 = int_to_ptr.vmem [resolvable:$true] %s403_s17 }
  0x5d   :  { %v97_v10 = vld [vmem:[#allocation7 + $0x38] sm:$0xff]  ;;  %414 = vmatmul.mubr.msk.f32.vlgmr.msra.gmra.mrb[0].mxu0 %vm125_vm0, %v122_v5  ;;  %v453_v11 = vpack.c.bf16 %v92_v8, %v90_v6  ;;  %v94_v13 = vld [vmem:[#allocation7 + $0x20] sm:$0xff]  ;;  %v96_v14 = vld [vmem:[#allocation7 + $0x30] sm:$0xff]  ;;  %p643_p13 = scmp.lt.s32.totalorder %s404_s17, %s404_s17 }
  0x5e   :  { %v455_v12 = vpack.c.bf16 %v97_v10, %v95_v9  ;;  %v99_v15 = vld [vmem:[#allocation7 + $0x48] sm:$0xff]  ;;  %452 = vmatprep.subr.bf16.mxu0 %v451_v7  ;;  %v101_v16 = vld [vmem:[#allocation7 + $0x58] sm:$0xff]  ;;  %264 = vmatprep.mubr.f32.mxu0 %v677_v0  ;;  %v457_v17 = vpack.c.bf16 %v96_v14, %v94_v13  ;;  %v98_v19 = vld [vmem:[#allocation7 + $0x40] sm:$0xff] }
  0x5f   :  { %454 = vmatpush1.bf16.msra.mxu0 %v453_v11  ;;  %v459_v18 = vpack.c.bf16 %v101_v16, %v99_v15  ;;  %v100_v20 = vld [vmem:[#allocation7 + $0x50] sm:$0xff]  ;;  %v103_v21 = vld [vmem:[#allocation7 + $0x68] sm:$0xff]  ;;  %v105_v22 = vld [vmem:[#allocation7 + $0x78] sm:$0xff] }
  0x60   :  { %456 = vmatprep.subr.bf16.mxu0 %v455_v12  ;;  %v461_v23 = vpack.c.bf16 %v100_v20, %v98_v19  ;;  %v463_v24 = vpack.c.bf16 %v105_v22, %v103_v21  ;;  %v102_v25 = vld [vmem:[#allocation7 + $0x60] sm:$0xff]  ;;  %v104_v26 = vld [vmem:[#allocation7 + $0x70] sm:$0xff]  ;;  %v107_v27 = vld [vmem:[#allocation7 + $0x88] sm:$0xff] }
  0x61   :  { %v109_v28 = vld [vmem:[#allocation7 + $0x98] sm:$0xff]  ;;  %v106_v29 = vld [vmem:[#allocation7 + $0x80] sm:$0xff]  ;;  %v108_v30 = vld [vmem:[#allocation7 + $0x90] sm:$0xff]  ;;  %v465_v34 = vpack.c.bf16 %v104_v26, %v102_v25 }
  0x62   :  { %v303_v31 = vld [vmem:[#allocation10 + $0x80] sm:$0xff]  ;;  %v304_v32 = vld [vmem:[#allocation10 + $0x88] sm:$0xff]  ;;  %v305_v37 = vld [vmem:[#allocation10 + $0x90] sm:$0xff]  ;;  %v467_v39 = vpack.c.bf16 %v109_v28, %v107_v27  ;;  %v469_v49 = vpack.c.bf16 %v108_v30, %v106_v29 }
  0x63   :  { %458 = vmatpush1.bf16.msra.mxu0 %v457_v17  ;;  %v287_v33 = vld [vmem:[#allocation10] sm:$0xff]  ;;  %v483_v35 = vpack.c.bf16 %v304_v32, %v303_v31  ;;  %v288_v36 = vld [vmem:[#allocation10 + $0x8] sm:$0xff]  ;;  %v306_v38 = vld [vmem:[#allocation10 + $0x98] sm:$0xff] }
  0x64   :  { %460 = vmatprep.subr.bf16.mxu0 %v459_v18  ;;  %v485_v40 = vpack.c.bf16 %v288_v36, %v287_v33  ;;  %v487_v41 = vpack.c.bf16 %v306_v38, %v305_v37  ;;  %v289_v42 = vld [vmem:[#allocation10 + $0x10] sm:$0xff]  ;;  %v290_v43 = vld [vmem:[#allocation10 + $0x18] sm:$0xff]  ;;  %v307_v44 = vld [vmem:[#allocation10 + $0xa0] sm:$0xff]  ;;  %v273_v37 = vlaneseq }
  0x65   :  { %v111_v45 = vld [vmem:[#allocation7 + $0xa8] sm:$0xff]  ;;  %v113_v46 = vld [vmem:[#allocation7 + $0xb8] sm:$0xff]  ;;  %484 = vmatprep.subr.bf16.mxu1 %v483_v35  ;;  %v489_v48 = vpack.c.bf16 %v290_v43, %v289_v42  ;;  %v110_v50 = vld [vmem:[#allocation7 + $0xa0] sm:$0xff] }
  0x66   :  { %v308_v47 = vld [vmem:[#allocation10 + $0xa8] sm:$0xff]  ;;  %486 = vmatpush3.bf16.msra.mxu1 %v485_v40  ;;  %v291_v52 = vld [vmem:[#allocation10 + $0x20] sm:$0xff]  ;;  %v471_v54 = vpack.c.bf16 %v113_v46, %v111_v45  ;;  %v309_v56 = vld [vmem:[#allocation10 + $0xb0] sm:$0xff]  ;;  %v274_v38 = vshrl.u32 %v273_v37, 7 }
  0x67   :  { %462 = vmatpush1.bf16.msra.mxu0 %v461_v23  ;;  %488 = vmatprep.subr.bf16.mxu1 %v487_v41  ;;  %v491_v51 = vpack.c.bf16 %v308_v47, %v307_v44  ;;  %v292_v53 = vld [vmem:[#allocation10 + $0x28] sm:$0xff]  ;;  %v112_v55 = vld [vmem:[#allocation7 + $0xb0] sm:$0xff]  ;;  %v310_v57 = vld [vmem:[#allocation10 + $0xb8] sm:$0xff] }
  0x68   :  { %464 = vmatprep.subr.bf16.mxu0 %v463_v24  ;;  %v115_v58 = vld [vmem:[#allocation7 + $0xc8] sm:$0xff]  ;;  %v117_v59 = vld [vmem:[#allocation7 + $0xd8] sm:$0xff]  ;;  %v493_v60 = vpack.c.bf16 %v292_v53, %v291_v52  ;;  %v473_v61 = vpack.c.bf16 %v112_v55, %v110_v50  ;;  %v114_v62 = vld [vmem:[#allocation7 + $0xc0] sm:$0xff]  ;;  %v495_v63 = vpack.c.bf16 %v310_v57, %v309_v56  ;;  %v279_v41 = vsub.s32 1, %v274_v38 }
  0x69   :  { %v293_v0 = vld [vmem:[#allocation10 + $0x30] sm:$0xff]  ;;  %v294_v1 = vld [vmem:[#allocation10 + $0x38] sm:$0xff]  ;;  %v475_v2 = vpack.c.bf16 %v117_v59, %v115_v58  ;;  %v116_v3 = vld [vmem:[#allocation7 + $0xd0] sm:$0xff] }
  0x6a   :  { %490 = vmatpush3.bf16.msra.mxu1 %v489_v48  ;;  %v311_v4 = vld [vmem:[#allocation10 + $0xc0] sm:$0xff]  ;;  %v312_v5 = vld [vmem:[#allocation10 + $0xc8] sm:$0xff]  ;;  %v119_v6 = vld [vmem:[#allocation7 + $0xe8] sm:$0xff]  ;;  %v497_v8 = vpack.c.bf16 %v294_v1, %v293_v0  ;;  %v477_v9 = vpack.c.bf16 %v116_v3, %v114_v62 }
  0x6b   :  { %466 = vmatpush1.bf16.msra.mxu0 %v465_v34  ;;  %492 = vmatprep.subr.bf16.mxu1 %v491_v51  ;;  %v121_v7 = vld [vmem:[#allocation7 + $0xf8] sm:$0xff]  ;;  %v118_v10 = vld [vmem:[#allocation7 + $0xe0] sm:$0xff]  ;;  %v499_v11 = vpack.c.bf16 %v312_v5, %v311_v4  ;;  %v295_v12 = vld [vmem:[#allocation10 + $0x40] sm:$0xff] }
  0x6c   :  { %468 = vmatprep.subr.bf16.mxu0 %v467_v39  ;;  %v296_v13 = vld [vmem:[#allocation10 + $0x48] sm:$0xff]  ;;  %v479_v14 = vpack.c.bf16 %v121_v7, %v119_v6  ;;  %v120_v15 = vld [vmem:[#allocation7 + $0xf0] sm:$0xff]  ;;  %v313_v16 = vld [vmem:[#allocation10 + $0xd0] sm:$0xff]  ;;  %v275_v39 = vsub.s32 0, %v274_v38 }
  0x6d   :  { %v314_v17 = vld [vmem:[#allocation10 + $0xd8] sm:$0xff]  ;;  %v501_v18 = vpack.c.bf16 %v296_v13, %v295_v12  ;;  %v481_v19 = vpack.c.bf16 %v120_v15, %v118_v10  ;;  %v297_v21 = vld [vmem:[#allocation10 + $0x50] sm:$0xff]  ;;  %v315_v23 = vld [vmem:[#allocation10 + $0xe0] sm:$0xff] }
  0x6e   :  { %494 = vmatpush3.bf16.msra.mxu1 %v493_v60  ;;  %v503_v20 = vpack.c.bf16 %v314_v17, %v313_v16  ;;  %v298_v22 = vld [vmem:[#allocation10 + $0x58] sm:$0xff]  ;;  %v316_v24 = vld [vmem:[#allocation10 + $0xe8] sm:$0xff]  ;;  %v89_v26 = vld [vmem:[#allocation2] sm:$0xff] }
  0x6f   :  { %470 = vmatpush1.bf16.msra.mxu0 %v469_v49  ;;  %496 = vmatprep.subr.bf16.mxu1 %v495_v63  ;;  %v505_v25 = vpack.c.bf16 %v298_v22, %v297_v21  ;;  %v507_v27 = vpack.c.bf16 %v316_v24, %v315_v23  ;;  %v299_v28 = vld [vmem:[#allocation10 + $0x60] sm:$0xff]  ;;  %v300_v29 = vld [vmem:[#allocation10 + $0x68] sm:$0xff]  ;;  %v317_v31 = vld [vmem:[#allocation10 + $0xf0] sm:$0xff] }
  0x70   :  { %472 = vmatprep.subr.bf16.mxu0 %v471_v54  ;;  %v509_v30 = vpack.c.bf16 %v300_v29, %v299_v28  ;;  %v318_v32 = vld [vmem:[#allocation10 + $0xf8] sm:$0xff]  ;;  %v301_v34 = vld [vmem:[#allocation10 + $0x70] sm:$0xff]  ;;  %v271_v40 = vld [vmem:[%s808_s4] sm:$0x3]  ;;  %s638_s4 = scalar_lea.vmem %s404_s17, 128 }
  0x71   :  { %v511_v33 = vpack.c.bf16 %v318_v32, %v317_v31  ;;  %v302_v35 = vld [vmem:[#allocation10 + $0x78] sm:$0xff]  ;;  %v276_v42 = vrot.slane %v271_v40, %v275_v39  ;;  %v280_v43 = vrot.slane %v271_v40, %v279_v41  ;;  %v415_v51 = vld [vmem:[%s810_s6] ss:$0 sm:$0xff]  ;;  %p639_p12 = scmp.ne.s32.totalorder %s404_s17, %s638_s4  ;;  %p644_p0 = scmp.lt.s32.totalorder %s638_s4, %s638_s4 }
  0x72   :  { %498 = vmatpush3.bf16.msra.mxu1 %v497_v8  ;;  %v513_v36 = vpack.c.bf16 %v302_v35, %v301_v34 }
  0x73   :  { %474 = vmatpush1.bf16.msra.mxu0 %v473_v61  ;;  %500 = vmatprep.subr.bf16.mxu1 %v499_v11  ;;  %p645_p1 = por %p644_p0, %p643_p13 }
  0x74   :  { %476 = vmatprep.subr.bf16.mxu0 %v475_v2 }
  0x75   :  { %p646_p2 = pnand %p645_p1, %p639_p12 }
  0x76   :  { %502 = vmatpush3.bf16.msra.mxu1 %v501_v18 }
  0x77   :  { %478 = vmatpush1.bf16.msra.mxu0 %v477_v9  ;;  %504 = vmatprep.subr.bf16.mxu1 %v503_v20 }
  0x78   :  { %480 = vmatprep.subr.bf16.mxu0 %v479_v14 }
  0x7a   :  { %506 = vmatpush3.bf16.msra.mxu1 %v505_v25 }
  0x7b   :  { %482 = vmatpush1.bf16.msra.mxu0 %v481_v19  ;;  %508 = vmatprep.subr.bf16.mxu1 %v507_v27 }
  0x7e   :  { %265 = vmatmul.mubr.f32.vlgmr.msra.gmra.mrb[0].mxu0 %v89_v26  ;;  %510 = vmatpush3.bf16.msra.mxu1 %v509_v30 }
  0x7f   :  { %512 = vmatprep.subr.bf16.mxu1 %v511_v33 }
  0x82   :  { %514 = vmatpush3.bf16.msra.mxu1 %v513_v36 }
 0x151   :  { %v266_v44 = vpop.f32.mrb[0].mxu0 }
 0x152   :  { %v283_v45 = vadd.f32 %v276_v42, %v266_v44  ;;  %v268_v46 = vpop.f32.mrb[1].mxu0 }
 0x153   :  { %v284_v47 = vadd.f32 %v280_v43, %v268_v46 }
 0x154   :  { %v285_v49 = vmax.f32 %v283_v45, 0.0 }
 0x155   :  { %v286_v48 = vmax.f32 %v284_v47, 0.0 }
 0x157   :  { %390 = vmatprep.mubr.f32.mxu1 %v286_v48 }
 0x158   :  { %391 = vmatmul.mubr.f32.vlgmr.msra.gmra.mrb[0].mxu1 %v285_v49 }
 0x22b   :  { %v448_v50 = vpop.f32.mrb[0].mxu1 }
 0x22c   :  { %v449_v52 = vpop.f32.mrb[1].mxu1 }
 0x22d   :  { %v450_v53 = vadd.f32 %v449_v52, %v448_v50 }
 0x22f   :  { %v393_v54 = vadd.f32 %v450_v53, %v415_v51 }
 0x231   :  { %396 = vst [vmem:[#allocation11] sm:$0xff] %v393_v54 }
 0x232   :  { %649 = shalt.err (!%p646_p2)
}
 0x233   :  { %s650_s20 = scalar_lea.hbm %s811_s7, 128 }
 0x234   :  { %p651_p3 = scmp.ne.s32.totalorder %s811_s7, %s650_s20  ;;  %p654_p4 = scmp.lt.u32.totalorder %s650_s20, %s811_s7 }
 0x236   :  { %p656_p5 = pnand %p654_p4, %p651_p3 }
 0x238   :  { %659 = shalt.err (!%p656_p5)
}
 0x239   :  { %406 = dma.vmem_to_hbm [thread:$0]  %s404_s17, 128, %s811_s7, [#allocation4]  }
 0x23a   :  { %666 = dma.done.wait [#allocation4], 128  }
 0x23b   :  { %667 = vsyncadd [#allocation4], 4294967168 }
 0x23c   :  { %410 = vsyncpa [#allocation3], 1 }
 0x23d   :  { %411 = vsyncpa [#allocation6], 1 }
 0x23e   :  { %412 = vsyncpa [#allocation9], 1 }
 0x23f   :  { %413 = vsyncpa [#allocation4], 1 }

</bundles_post_ra>
